<compile_context>
chip_gen: v5e
topology: v5e:2x2
jax: 0.10.0
libtpu: 0.0.40
codegen_flags: <defaults>
</compile_context>

<pallas_src>
import jax
import jax.numpy as jnp
from jax import lax
from jax.experimental import pallas as pl
from jax.experimental.pallas import tpu as pltpu


def _round_up(x, m):
    return (x + m - 1) // m * m


def stem_kernel(x_ref, w_ref, b_ref, o_ref):
    # (tm, 128) @ (128, 128) bf16 -> f32 accumulate on the MXU;
    # fused (BN-folded) bias add + ReLU on the VPU; 128-lane dense bf16 store.
    acc = jnp.dot(x_ref[...], w_ref[...], preferred_element_type=jnp.float32)
    o_ref[...] = jnp.maximum(acc + b_ref[...], 0.0).astype(o_ref.dtype)


def conv_bn_relu_stem(x_nchw, w_oihw, bias, gamma, beta, mean, var,
                      *, stride=2, pad=1, eps=1e-5,
                      tm_target=2048, min_grid_steps=8,
                      out_dtype=jnp.bfloat16):
    N, Cin, H, W = x_nchw.shape
    Cout, _, kh, kw = w_oihw.shape
    Ho = (H + 2 * pad - kh) // stride + 1
    Wo = (W + 2 * pad - kw) // stride + 1
    K = kh * kw * Cin
    M = N * Ho * Wo

    # ---- fold BatchNorm(eval) + conv bias into (w', b') — exact refactor ----
    scale = gamma * lax.rsqrt(var + eps)                       # (Cout,)
    w_f = w_oihw * scale[:, None, None, None]                  # (Cout,Cin,kh,kw)
    b_f = (bias - mean) * scale + beta                         # (Cout,)

    # ---- lane-dense packing: P output pixels per packed row (P*Cout = 128) ----
    assert 128 % Cout == 0, "packing assumes Cout divides 128"
    P = 128 // Cout                                            # 4 for Cout=32
    Kp = _round_up(K, 128 // P)                                # 27 -> 32
    lanes_in = P * Kp                                          # 128
    lanes_out = P * Cout                                       # 128

    # ---- im2col (index plumbing; fused by XLA under the surrounding jit) ----
    # bf16-early: halves every host-side activation pass before the kernel.
    x = jnp.transpose(x_nchw.astype(jnp.bfloat16), (0, 2, 3, 1))   # NHWC bf16
    xp = jnp.pad(x, ((0, 0), (pad, pad), (pad, pad), (0, 0)))
    cols = [xp[:, i:i + stride * Ho:stride, j:j + stride * Wo:stride, :]
            for i in range(kh) for j in range(kw)]
    patches = jnp.stack(cols, axis=3).reshape(M, K)            # (M, kh*kw*Cin)

    # ---- choose row tile: big (amortize grid-step overhead), but keep at
    # ---- least `min_grid_steps` steps for v7x dual-TensorCore sharding ------
    R = -(-M // P)                                             # packed rows
    tm = min(tm_target, _round_up(-(-R // min_grid_steps), 16))
    tm = max(16, min(tm, _round_up(R, 16)))
    Rp = _round_up(R, tm)
    Mp = Rp * P

    patches = jnp.pad(patches, ((0, Mp - M), (0, Kp - K)))
    packed = patches.reshape(Rp, lanes_in)                     # bf16 (Rp, 128)

    # weight flattened in the same (kh, kw, Cin) order as the patches,
    # zero-padded to Kp rows, then block-diagonal replicated P times.
    wk = jnp.transpose(w_f, (2, 3, 1, 0)).reshape(K, Cout)
    wk = jnp.pad(wk, ((0, Kp - K), (0, 0)))                    # (Kp, Cout)
    w_packed = jnp.kron(jnp.eye(P, dtype=wk.dtype), wk).astype(jnp.bfloat16)
    b_packed = jnp.tile(b_f, P).reshape(1, lanes_out).astype(jnp.float32)

    grid = (Rp // tm,)
    out_bytes = Rp * lanes_out * jnp.dtype(out_dtype).itemsize
    bytes_accessed = (packed.size * 2 + w_packed.size * 2
                      + b_packed.size * 4 + out_bytes)

    out = pl.pallas_call(
        stem_kernel,
        out_shape=jax.ShapeDtypeStruct((Rp, lanes_out), out_dtype),
        grid=grid,
        in_specs=[
            pl.BlockSpec((tm, lanes_in), lambda i: (i, 0)),         # packed patches
            pl.BlockSpec((lanes_in, lanes_out), lambda i: (0, 0)),  # weight (resident)
            pl.BlockSpec((1, lanes_out), lambda i: (0, 0)),         # fused bias
        ],
        out_specs=pl.BlockSpec((tm, lanes_out), lambda i: (i, 0)),
        compiler_params=pltpu.CompilerParams(
            dimension_semantics=("parallel",),
            vmem_limit_bytes=32 << 20),
        cost_estimate=pl.CostEstimate(
            flops=2 * Rp * lanes_in * lanes_out,
            transcendentals=0,
            bytes_accessed=bytes_accessed),
    )(packed, w_packed, b_packed)

    # bf16 epilogue (half the transpose traffic of the old f32 path).
    # Downstream consumers that accept NHWC can skip this transpose entirely.
    out = out.reshape(Mp, Cout)[:M].reshape(N, Ho, Wo, Cout)
    return jnp.transpose(out, (0, 3, 1, 2))                    # NCHW, bf16


def fibnet_forward(x, params):
    """FibNet.forward (classification mode), eval semantics.

    inputs = conv1(inputs); inputs = drop(inputs)  [identity in eval];
    outputs = encoder(inputs)  -> see TODO above.
    """
    y = conv_bn_relu_stem(x, params["w"], params["b"], params["gamma"],
                          params["beta"], params["mean"], params["var"])
    # nn.Dropout(0.2) is identity at inference time.
    # TODO(synk): self.encoder(...) — Encoder definition not in provided source.
    return y


def _reference(x, params, eps=1e-5):
    ref = lax.conv_general_dilated(
        x, params["w"], window_strides=(2, 2), padding=((1, 1), (1, 1)),
        dimension_numbers=("NCHW", "OIHW", "NCHW"))
    ref = ref + params["b"][None, :, None, None]
    inv = lax.rsqrt(params["var"] + eps)[None, :, None, None]
    ref = (ref - params["mean"][None, :, None, None]) * inv \
          * params["gamma"][None, :, None, None] \
          + params["beta"][None, :, None, None]
    return jnp.maximum(ref, 0.0)


if __name__ == "__main__":
    key = jax.random.PRNGKey(0)
    k_x, k_w, k_x2 = jax.random.split(key, 3)

    N, Cin, H, W = 2, 3, 16, 16
    Cout, kh, kw = 32, 3, 3

    x = jax.random.normal(k_x, (N, Cin, H, W), dtype=jnp.float32)

    # _initialize_weights: Conv2d weight ~ N(0, sqrt(2/(kh*kw*Cout))), bias = 0,
    # BatchNorm2d weight = 1, bias = 0 (running stats default: mean 0, var 1).
    fan = kh * kw * Cout
    params = {
        "w": jax.random.normal(k_w, (Cout, Cin, kh, kw), jnp.float32)
             * jnp.sqrt(2.0 / fan),
        "b": jnp.zeros((Cout,), jnp.float32),
        "gamma": jnp.ones((Cout,), jnp.float32),
        "beta": jnp.zeros((Cout,), jnp.float32),
        "mean": jnp.zeros((Cout,), jnp.float32),
        "var": jnp.ones((Cout,), jnp.float32),
    }

    fwd = jax.jit(fibnet_forward)

    # small shape (single/dual grid step)
    y = jax.block_until_ready(fwd(x, params))
    assert y.shape == (N, Cout, H // 2, W // 2), y.shape
    ref = _reference(x, params)
    err = float(jnp.abs(y.astype(jnp.float32) - ref).max())
    assert jnp.allclose(y.astype(jnp.float32), ref, atol=4e-2, rtol=4e-2), err

    # slightly larger shape: exercises the multi-step "parallel" grid path
    x2 = jax.random.normal(k_x2, (2, Cin, 64, 64), dtype=jnp.float32)
    y2 = jax.block_until_ready(fwd(x2, params))
    assert y2.shape == (2, Cout, 32, 32), y2.shape
    ref2 = _reference(x2, params)
    err2 = float(jnp.abs(y2.astype(jnp.float32) - ref2).max())
    assert jnp.allclose(y2.astype(jnp.float32), ref2, atol=4e-2, rtol=4e-2), err2

    print("KERNEL_OK")
</pallas_src>

<mosaic_0001>
module attributes {stable_mosaic.version = 11 : i64} {
  func.func @stem_kernel(%arg0: i32, %arg1: memref<16x128xbf16, #tpu.memory_space<vmem>>, %arg2: memref<128x128xbf16, #tpu.memory_space<vmem>>, %arg3: memref<1x128xf32, #tpu.memory_space<vmem>>, %arg4: memref<16x128xbf16, #tpu.memory_space<vmem>>) attributes {dimension_semantics = [#tpu.dimension_semantics<parallel>], iteration_bounds = array<i64: 2>, scalar_prefetch = 0 : i64, scratch_operands = 0 : i64, tpu.core_type = #tpu.core_type<tc>, window_params = [{transform_indices = @transform_0, window_bounds = array<i64: 16, 128>}, {pipeline_mode = #tpu.pipeline_mode<synchronous>, transform_indices = @transform_1, window_bounds = array<i64: 128, 128>}, {pipeline_mode = #tpu.pipeline_mode<synchronous>, transform_indices = @transform_2, window_bounds = array<i64: 1, 128>}, {transform_indices = @transform_3, window_bounds = array<i64: 16, 128>}]} {
    %c0 = arith.constant 0 : index
    %c0_0 = arith.constant 0 : index
    %0 = vector.load %arg1[%c0, %c0_0] : memref<16x128xbf16, #tpu.memory_space<vmem>>, vector<16x128xbf16>
    %c0_1 = arith.constant 0 : index
    %c0_2 = arith.constant 0 : index
    %1 = vector.load %arg2[%c0_1, %c0_2] : memref<128x128xbf16, #tpu.memory_space<vmem>>, vector<128x128xbf16>
    %cst = arith.constant dense<0.000000e+00> : vector<16x128xf32>
    %2 = tpu.matmul %0, %1, %cst {dimension_numbers = #tpu.dot_dimension_numbers<[1], [0], [0], [1], [0, 0, 1, 1], [], []>} : vector<16x128xbf16>, vector<128x128xbf16>, vector<16x128xf32> -> vector<16x128xf32>
    %c0_3 = arith.constant 0 : index
    %c0_4 = arith.constant 0 : index
    %3 = vector.load %arg3[%c0_3, %c0_4] : memref<1x128xf32, #tpu.memory_space<vmem>>, vector<1x128xf32>
    %4 = vector.broadcast %3 : vector<1x128xf32> to vector<16x128xf32>
    %5 = arith.addf %2, %4 : vector<16x128xf32>
    %cst_5 = arith.constant 0.000000e+00 : f32
    %6 = vector.broadcast %cst_5 : f32 to vector<16x128xf32>
    %7 = arith.maximumf %5, %6 : vector<16x128xf32>
    %8 = arith.truncf %7 : vector<16x128xf32> to vector<16x128xbf16>
    %c0_6 = arith.constant 0 : index
    %c0_7 = arith.constant 0 : index
    %9 = vector.load %arg4[%c0_6, %c0_7] : memref<16x128xbf16, #tpu.memory_space<vmem>>, vector<16x128xbf16>
    tpu.vector_store %arg4[%c0_6, %c0_7], %8 {strides = array<i32>} : memref<16x128xbf16, #tpu.memory_space<vmem>>, vector<16x128xbf16>,
    return
  }
  func.func @transform_0(%arg0: i32) -> (i32, i32) {
    %c0_i32 = arith.constant 0 : i32
    %c0_i32_0 = arith.constant 0 : i32
    return %arg0, %c0_i32 : i32, i32
  }
  func.func @transform_1(%arg0: i32) -> (i32, i32) {
    %c0_i32 = arith.constant 0 : i32
    %c0_i32_0 = arith.constant 0 : i32
    %c0_i32_1 = arith.constant 0 : i32
    return %c0_i32, %c0_i32_0 : i32, i32
  }
  func.func @transform_2(%arg0: i32) -> (i32, i32) {
    %c0_i32 = arith.constant 0 : i32
    %c0_i32_0 = arith.constant 0 : i32
    %c0_i32_1 = arith.constant 0 : i32
    return %c0_i32, %c0_i32_0 : i32, i32
  }
  func.func @transform_3(%arg0: i32) -> (i32, i32) {
    %c0_i32 = arith.constant 0 : i32
    %c0_i32_0 = arith.constant 0 : i32
    return %arg0, %c0_i32 : i32, i32
  }
}

</mosaic_0001>

<bundles_post_ra>
// kernel: tile.8
= control target key start
LH: loop header
LB: loop body
LE: loop exit
PB: predicated region body
PF: predicated region fallthrough
CT: control target
= control target key end

     0   :  { %s22_s0 = inlined_call_operand.vmem [shape: f32[32], index: 0, kind: input, shape index: {}]   ;;  %s23_s1 = inlined_call_operand.vmem [shape: f32[4,32], index: 1, kind: output, shape index: {}]  }
   0x1   :  { %v4_v0 = vld [vmem:[%s22_s0] ss:$0 sm:$0xff] }
   0x2   :  { %5 = vst [vmem:[%s23_s1] sm:$0xf] %v4_v0 }

// kernel: tile.9
= control target key start
LH: loop header
LB: loop body
LE: loop exit
PB: predicated region body
PF: predicated region fallthrough
CT: control target
= control target key end

     0   :  { %s37_s8 = smov 32   ;;  %s38_s9 = smov 64   ;;  %vm7_vm0 = vcmask 261120   ;;  %vm13_vm1 = vcmask 1048320   ;;  %vm19_vm2 = vcmask 785920   ;;  %vm25_vm3 = vcmask 523520   ;;  %s55_s0 = inlined_call_operand.vmem [shape: f32[4,32], index: 0, kind: input, shape index: {}]   ;;  %s56_s1 = inlined_call_operand.vmem [shape: f32[1,128], index: 1, kind: output, shape index: {}]  }
   0x1   :  { %v4_v0 = vld [vmem:[%s55_s0] sm:$0xf]  ;;  %s36_s0 = smov 96  }
   0x2   :  { %5 = vst [vmem:[#allocation1] sm:$0xf] %v4_v0 }
   0x9   :  { %v10_v1 = vld [vmem:[#allocation1 + $0x3] sm:$0x1]   ;;  %v22_v2 = vld [vmem:[#allocation1 + $0x1] sm:$0x1]   ;;  %v16_v3 = vld [vmem:[#allocation1 + $0x2] sm:$0x1]  }
   0xa   :  { %11 = vrot.lane.b32.xlu0 %v10_v1, %s36_s0  ;;  %23 = vrot.lane.b32.xlu1 %v22_v2, %s37_s8  ;;  %v6_v4 = vld [vmem:[#allocation1] sm:$0x1]  }
   0xb   :  { %8 = vst.msk [vmem:[#allocation0] sm:$0x1] %vm7_vm0, %v6_v4  }
  0x12   :  { %17 = vrot.lane.b32.xlu0 %v16_v3, %s38_s9 }
  0x7c   :  { %v12_v5 = vpop.permute.xlu0 %11   ;;  %v24_v6 = vpop.permute.xlu1 %23  }
  0x7d   :  { %14 = vst.msk [vmem:[#allocation0] sm:$0x1] %vm13_vm1, %v12_v5  }
  0x84   :  { %v18_v7 = vpop.permute.xlu0 %17  }
  0x85   :  { %20 = vst.msk [vmem:[#allocation0] sm:$0x1] %vm19_vm2, %v18_v7  }
  0x86   :  { %26 = vst.msk [vmem:[#allocation0] sm:$0x1] %vm25_vm3, %v24_v6  }
  0x8d   :  { %v29_v8 = vld [vmem:[#allocation0] sm:$0x1] }
  0x8e   :  { %32 = vst [vmem:[%s56_s1] sm:$0x1] %v29_v8 }

// kernel: fibnet_forward.1
= control target key start
LH: loop header
LB: loop body
LE: loop exit
PB: predicated region body
PF: predicated region fallthrough
CT: control target
= control target key end

     0   :  { %s424_s12 = smov 0   ;;  %s468_s0 = inlined_call_operand.vmem [shape: bf16[32,128], index: 0, kind: input, shape index: {}]   ;;  %s469_s1 = inlined_call_operand.vmem [shape: bf16[128,128], index: 1, kind: input, shape index: {}]   ;;  %s470_s2 = inlined_call_operand.vmem [shape: f32[1,128], index: 2, kind: input, shape index: {}]   ;;  %s471_s3 = inlined_call_operand.vmem [shape: bf16[32,128], index: 3, kind: output, shape index: {}]  }
   0x1 LB: > { %s326_s13 = sadd.s32 4294967295, %s402_s12   ;;  %p330_p0 = scmp.ge.s32.totalorder %s402_s12, 1  ;;  %s402_s12 = sphi %s424_s12, %s13_s12  }
   0x2   : > { %p138_p1 = scmp.lt.s32.totalorder %s402_s12, 3 }
   0x4   : > { %p139_p2 = pnand %p330_p0, %p138_p1 }
   0x5   : > { %s331_s22 = sshll.u32 (!%p139_p2), %s326_s13, 1 }
   0x6   : > { %142 = sbr.rel (%p139_p2) target bundleno = 184 (0xb8), region = 32  ;;  %p163_p3 = scmp.lt.s32.totalorder (!%p139_p2), %s331_s22, 3 }
   0xb   : > { %v381_v0 = vld [vmem:[%s469_s1 + $0x38] sm:$0xff]  ;;  %v380_v1 = vld [vmem:[%s469_s1 + $0x30] sm:$0xff]  ;;  %v379_v2 = vld [vmem:[%s469_s1 + $0x28] sm:$0xff]  ;;  %s473_s22 = smov (!%p163_p3, %s331_s22), 3 }
   0xc   : > { %250 = vmatpush.bf16.msra.mxu0 %v381_v0  ;;  %v378_v3 = vld [vmem:[%s469_s1 + $0x20] sm:$0xff]  ;;  %v377_v4 = vld [vmem:[%s469_s1 + $0x18] sm:$0xff]  ;;  %v376_v5 = vld [vmem:[%s469_s1 + $0x10] sm:$0xff]  ;;  %s332_s29 = sshll.u32 %s473_s22, 2 }
   0xd   : > { %v375_v6 = vld [vmem:[%s469_s1 + $0x8] sm:$0xff]  ;;  %v374_v7 = vld [vmem:[%s469_s1] sm:$0xff]  ;;  %s166_s7 = scalar_lea.vmem %s468_s0, %s332_s29  ;;  %s172_s13 = scalar_lea.vmem %s471_s3, %s332_s29 }
   0xe   : > { %v373_v8 = vld [vmem:[%s166_s7] sm:$0xff] }
   0xf   : > { %v395_v10 = vld [vmem:[%s470_s2] ss:$0 sm:$0xff] }
  0x10   : > { %251 = vmatpush.bf16.msra.mxu0 %v380_v1 }
  0x14   : > { %252 = vmatpush.bf16.msra.mxu0 %v379_v2 }
  0x18   : > { %253 = vmatpush.bf16.msra.mxu0 %v378_v3 }
  0x1c   : > { %254 = vmatpush.bf16.msra.mxu0 %v377_v4 }
  0x20   : > { %255 = vmatpush.bf16.msra.mxu0 %v376_v5 }
  0x24   : > { %256 = vmatpush.bf16.msra.mxu0 %v375_v6 }
  0x28   : > { %257 = vmatpush.bf16.msra.mxu0 %v374_v7 }
  0x2b   : > { %258 = vmatmul.bf16.vlgmr.msra.gmra.mxu0 %v373_v8 }
  0xa8   : > { %v259_v9 = vpop.f32.mrf.mxu0 }
  0xa9   : > { %v260_v11 = vadd.f32 %v395_v10, %v259_v9 }
  0xab   : > { %v264_v14 = vmax.f32 %v260_v11, 0.0 }
  0xb0   : > { %v261_v12 = vpop.f32.mrf.mxu0 }
  0xb1   : > { %v262_v13 = vadd.f32 %v395_v10, %v261_v12 }
  0xb3   : > { %v265_v15 = vmax.f32 %v262_v13, 0.0 }
  0xb5   : > { %v385_v16 = vpack.c.bf16 %v265_v15, %v264_v14 }
  0xb7   : > { %386 = vst [vmem:[%s172_s13] sm:$0xff] %v385_v16  }
  0xb8 PF: > { %s13_s12 = sadd.s32 1, %s402_s12  }
  0xb9   : > { %p10_p4 = scmp.ge.s32.totalorder %s13_s12, 4  }
  0xbb   :  { %12 = sbr.rel (!%p10_p4) target bundleno = 1 (0x1), region = 62 }

</bundles_post_ra>
